<compile_context>
chip_gen: v7x
topology: tpu7x:2x2x1
jax: 0.10.0
libtpu: 0.0.40
codegen_flags: <defaults>
</compile_context>

<pallas_src>
import jax
import jax.numpy as jnp
from jax.experimental import pallas as pl
from jax.experimental.pallas import tpu as pltpu


# ----------------------------------------------------------------------------
# Fused kernel: one packed matmul + all gate nonlinearities + cell update
# ----------------------------------------------------------------------------

def _compose_kernel(x_ref, lc_ref, rc_ref, w_ref, b_ref, ch_ref):
    hidden = lc_ref.shape[-1]
    # Single lane-dense MXU pass over the fused [lh | rh] operand.
    # Gate order along lanes: [ i | lf | rf | u ], each `hidden` wide.
    gates = jnp.dot(x_ref[...], w_ref[...],
                    preferred_element_type=jnp.float32) + b_ref[...]
    # Lane-dense activations: sigmoid on the i/lf/rf lanes, tanh on the u lanes.
    lane = jax.lax.broadcasted_iota(jnp.int32, gates.shape, 1)
    act = jnp.where(lane < 3 * hidden, jax.nn.sigmoid(gates), jnp.tanh(gates))
    i = act[:, 0 * hidden:1 * hidden]
    lf = act[:, 1 * hidden:2 * hidden]
    rf = act[:, 2 * hidden:3 * hidden]
    u = act[:, 3 * hidden:4 * hidden]
    c = i * u + lf * lc_ref[...] + rf * rc_ref[...]
    # One concatenated (tile, 2H) output block -> single output DMA stream.
    ch_ref[:, :hidden] = c
    ch_ref[:, hidden:] = jnp.tanh(c)


def _choose_tile(n, block_rows):
    """Row tile: multiple of 16 (sublane-safe for f32 and bf16) or the full N."""
    if n <= 8:
        return n                                     # block equals the array dim
    half = ((n + 1) // 2 + 15) // 16 * 16            # >=2 grid steps -> 2 v7x TCs
    return max(16, min(block_rows, half))


def binary_tree_compose(lc, lh, rc, rh, packed, *, block_rows=512,
                        mxu_dtype=jnp.float32):
    """Batched BinaryTreeComposer forward.

    lc, rc : [N, hidden]   child cell states (stay f32)
    lh, rh : [N, in_dim]   child inputs fed to the gate Linears
    packed : (w [2*in_dim, 4H] stacked gate weights, b [1, 4H] pre-summed bias)
    returns (c, h) each [N, hidden] float32
    """
    n, hidden = lc.shape
    in_dim = lh.shape[1]
    w, b = packed

    # Contiguous gate operand [N, 2*in_dim]: lets the kernel do ONE K=2*in_dim
    # MXU pass instead of two under-filled K=in_dim passes.  (A production tree
    # loop should produce lh||rh in this layout directly so this concat vanishes.)
    x = jnp.concatenate([lh, rh], axis=1)
    if x.dtype != mxu_dtype:
        x = x.astype(mxu_dtype)
    if w.dtype != mxu_dtype:
        w = w.astype(mxu_dtype)

    tile = _choose_tile(n, block_rows)
    grid = pl.cdiv(n, tile)      # ragged last block handled by Pallas, no host pad

    def row_spec(d):
        return pl.BlockSpec((tile, d), lambda i: (i, 0))

    def fixed_spec(r, c_):
        # Grid-invariant block: weights / bias stay resident in VMEM across steps.
        return pl.BlockSpec((r, c_), lambda i: (0, 0))

    # Explicit VMEM budget: double-buffered row tiles + 2x weight blocks + temps.
    itemsize = jnp.dtype(mxu_dtype).itemsize
    io_bytes = 2 * tile * ((2 * in_dim) * itemsize + 4 * hidden * 4)   # in + out
    weight_bytes = 2 * ((2 * in_dim) * (4 * hidden) * itemsize + 4 * hidden * 4)
    temp_bytes = 4 * tile * 4 * hidden * 4                             # gates/act
    vmem_limit = int(min(io_bytes + weight_bytes + temp_bytes + (16 << 20),
                         60 << 20))                                    # v7x-safe

    cost = pl.CostEstimate(
        flops=2 * n * (2 * in_dim) * (4 * hidden),
        transcendentals=5 * n * hidden,
        bytes_accessed=(n * (2 * in_dim) * itemsize           # x = lh||rh
                        + 2 * n * hidden * 4                  # lc, rc
                        + 2 * n * hidden * 4                  # c||h out
                        + (2 * in_dim) * (4 * hidden) * itemsize
                        + 4 * hidden * 4))

    ch = pl.pallas_call(
        _compose_kernel,
        out_shape=jax.ShapeDtypeStruct((n, 2 * hidden), jnp.float32),
        grid_spec=pltpu.PrefetchScalarGridSpec(
            num_scalar_prefetch=0,
            grid=(grid,),
            in_specs=[
                row_spec(2 * in_dim),                   # x = [lh | rh]
                row_spec(hidden), row_spec(hidden),     # lc, rc
                fixed_spec(2 * in_dim, 4 * hidden),     # stacked gate weights
                fixed_spec(1, 4 * hidden),              # pre-summed bias
            ],
            out_specs=row_spec(2 * hidden),
        ),
        compiler_params=pltpu.CompilerParams(
            dimension_semantics=("parallel",),
            vmem_limit_bytes=vmem_limit),
        cost_estimate=cost,
    )(x, lc, rc, w, b)
    return ch[:, :hidden], ch[:, hidden:]


# ----------------------------------------------------------------------------
# Parameters: PyTorch nn.Linear default init, then packed for the fused kernel
# ----------------------------------------------------------------------------

def init_params(key, in_dim, hidden_dim):
    names = ["ilh", "irh", "lflh", "lfrh", "rflh", "rfrh", "ulh", "urh"]
    keys = jax.random.split(key, len(names))
    bound = 1.0 / (in_dim ** 0.5)
    params = {}
    for name, k in zip(names, keys):
        kw, kb = jax.random.split(k)
        w = jax.random.uniform(kw, (hidden_dim, in_dim), jnp.float32, -bound, bound)
        b = jax.random.uniform(kb, (hidden_dim,), jnp.float32, -bound, bound)
        params[name] = (w, b)
    return params


def pack_params(params):
    """Pack the eight per-gate Linears into one stacked weight and one bias.

    Gate lane order: [ i | lf | rf | u ].
      lh-side gates: ilh, lflh, rflh, ulh      -> rows [0, in_dim)
      rh-side gates: irh, lfrh, lfrh, urh      -> rows [in_dim, 2*in_dim)
        (lfrh intentionally reused for rf; rfrh exists in the module but is
         never applied — exactly as in the original PyTorch forward.)
    The lh-side and rh-side bias rows are pre-summed into a single [1, 4H] bias.
    """
    lh_gates = ["ilh", "lflh", "rflh", "ulh"]
    rh_gates = ["irh", "lfrh", "lfrh", "urh"]
    wl = jnp.concatenate([params[nm][0].T for nm in lh_gates], axis=1)  # [in, 4H]
    wr = jnp.concatenate([params[nm][0].T for nm in rh_gates], axis=1)  # [in, 4H]
    w = jnp.concatenate([wl, wr], axis=0)                               # [2*in, 4H]
    b = (jnp.concatenate([params[nm][1] for nm in lh_gates])
         + jnp.concatenate([params[nm][1] for nm in rh_gates]))[None, :]  # [1, 4H]
    return w, b


# ----------------------------------------------------------------------------
# Pure-JAX reference (mirrors the PyTorch forward literally) for validation
# ----------------------------------------------------------------------------

def reference_forward(params, lc, lh, rc, rh):
    def lin(name, x):
        w, b = params[name]
        return x @ w.T + b

    i = jax.nn.sigmoid(lin("ilh", lh) + lin("irh", rh))
    lf = jax.nn.sigmoid(lin("lflh", lh) + lin("lfrh", rh))
    rf = jax.nn.sigmoid(lin("rflh", lh) + lin("lfrh", rh))
    u = jnp.tanh(lin("ulh", lh) + lin("urh", rh))
    c = i * u + lf * lc + rf * rc
    h = jnp.tanh(c)
    return c, h


# ----------------------------------------------------------------------------
# Main
# ----------------------------------------------------------------------------

if __name__ == "__main__":
    embed_dim = 16    # in_dim of the gate Linears (applied to lh / rh)
    hidden_dim = 32   # gate width; lc / rc / c / h feature dim

    key = jax.random.PRNGKey(0)
    k_param, k_data = jax.random.split(key)
    params = init_params(k_param, embed_dim, hidden_dim)
    packed = pack_params(params)

    def make_inputs(k, n):
        k_lc, k_lh, k_rc, k_rh = jax.random.split(k, 4)
        return (jax.random.normal(k_lc, (n, hidden_dim), jnp.float32),
                jax.random.normal(k_lh, (n, embed_dim), jnp.float32),
                jax.random.normal(k_rc, (n, hidden_dim), jnp.float32),
                jax.random.normal(k_rh, (n, embed_dim), jnp.float32))

    # (n_nodes, MXU dtype, tolerance): exact single-tile case, ragged multi-step
    # case (exercises the no-pad tail masking + 2-step grid), and the bf16-MXU
    # path (v6e/v7x) with its looser tolerance.
    cases = [(8, jnp.float32, 1e-5),
             (300, jnp.float32, 1e-5),
             (300, jnp.bfloat16, 3e-2)]
    ks = jax.random.split(k_data, len(cases))
    for k, (n_nodes, mxu_dtype, tol) in zip(ks, cases):
        lc, lh, rc, rh = make_inputs(k, n_nodes)
        c, h = jax.block_until_ready(
            binary_tree_compose(lc, lh, rc, rh, packed, mxu_dtype=mxu_dtype))
        c_ref, h_ref = reference_forward(params, lc, lh, rc, rh)
        assert c.shape == (n_nodes, hidden_dim) and h.shape == (n_nodes, hidden_dim)
        assert c.dtype == jnp.float32 and h.dtype == jnp.float32
        assert jnp.allclose(c, c_ref, atol=tol, rtol=tol), (n_nodes, str(mxu_dtype))
        assert jnp.allclose(h, h_ref, atol=tol, rtol=tol), (n_nodes, str(mxu_dtype))

    print("KERNEL_OK")
</pallas_src>

<mosaic_0001>
module attributes {stable_mosaic.version = 11 : i64} {
  func.func @_compose_kernel(%arg0: i32, %arg1: memref<8x32xf32, #tpu.memory_space<vmem>>, %arg2: memref<8x32xf32, #tpu.memory_space<vmem>>, %arg3: memref<8x32xf32, #tpu.memory_space<vmem>>, %arg4: memref<32x128xf32, #tpu.memory_space<vmem>>, %arg5: memref<1x128xf32, #tpu.memory_space<vmem>>, %arg6: memref<8x64xf32, #tpu.memory_space<vmem>>) attributes {dimension_semantics = [#tpu.dimension_semantics<parallel>], iteration_bounds = array<i64: 1>, scalar_prefetch = 0 : i64, scratch_operands = 0 : i64, tpu.core_type = #tpu.core_type<tc>, window_params = [{transform_indices = @transform_0, window_bounds = array<i64: 8, 32>}, {transform_indices = @transform_1, window_bounds = array<i64: 8, 32>}, {transform_indices = @transform_2, window_bounds = array<i64: 8, 32>}, {pipeline_mode = #tpu.pipeline_mode<synchronous>, transform_indices = @transform_3, window_bounds = array<i64: 32, 128>}, {pipeline_mode = #tpu.pipeline_mode<synchronous>, transform_indices = @transform_4, window_bounds = array<i64: 1, 128>}, {transform_indices = @transform_5, window_bounds = array<i64: 8, 64>}]} {
    %c0 = arith.constant 0 : index
    %c0_0 = arith.constant 0 : index
    %0 = vector.load %arg1[%c0, %c0_0] : memref<8x32xf32, #tpu.memory_space<vmem>>, vector<8x32xf32>
    %c0_1 = arith.constant 0 : index
    %c0_2 = arith.constant 0 : index
    %1 = vector.load %arg4[%c0_1, %c0_2] : memref<32x128xf32, #tpu.memory_space<vmem>>, vector<32x128xf32>
    %cst = arith.constant dense<0.000000e+00> : vector<8x128xf32>
    %2 = tpu.matmul %0, %1, %cst {dimension_numbers = #tpu.dot_dimension_numbers<[1], [0], [0], [1], [0, 0, 1, 1], [], []>} : vector<8x32xf32>, vector<32x128xf32>, vector<8x128xf32> -> vector<8x128xf32>
    %c0_3 = arith.constant 0 : index
    %c0_4 = arith.constant 0 : index
    %3 = vector.load %arg5[%c0_3, %c0_4] : memref<1x128xf32, #tpu.memory_space<vmem>>, vector<1x128xf32>
    %4 = vector.broadcast %3 : vector<1x128xf32> to vector<8x128xf32>
    %5 = arith.addf %2, %4 : vector<8x128xf32>
    %6 = tpu.iota {dimensions = array<i32: 1>} : vector<8x128xi32>
    %c96_i32 = arith.constant 96 : i32
    %7 = vector.broadcast %c96_i32 : i32 to vector<8x128xi32>
    %8 = arith.cmpi slt, %6, %7 : vector<8x128xi32>
    %9 = arith.negf %5 : vector<8x128xf32>
    %10 = math.exp %9 : vector<8x128xf32>
    %cst_5 = arith.constant 1.000000e+00 : f32
    %11 = vector.broadcast %cst_5 : f32 to vector<8x128xf32>
    %12 = arith.addf %11, %10 : vector<8x128xf32>
    %13 = arith.divf %11, %12 : vector<8x128xf32>
    %14 = math.tanh %5 : vector<8x128xf32>
    %15 = arith.select %8, %13, %14 : vector<8x128xi1>, vector<8x128xf32>
    %16 = vector.extract_strided_slice %15 {offsets = [0, 0], sizes = [8, 32], strides = [1, 1]} : vector<8x128xf32> to vector<8x32xf32>
    %17 = vector.extract_strided_slice %15 {offsets = [0, 32], sizes = [8, 32], strides = [1, 1]} : vector<8x128xf32> to vector<8x32xf32>
    %18 = vector.extract_strided_slice %15 {offsets = [0, 64], sizes = [8, 32], strides = [1, 1]} : vector<8x128xf32> to vector<8x32xf32>
    %19 = vector.extract_strided_slice %15 {offsets = [0, 96], sizes = [8, 32], strides = [1, 1]} : vector<8x128xf32> to vector<8x32xf32>
    %20 = arith.mulf %16, %19 : vector<8x32xf32>
    %c0_6 = arith.constant 0 : index
    %c0_7 = arith.constant 0 : index
    %21 = vector.load %arg2[%c0_6, %c0_7] : memref<8x32xf32, #tpu.memory_space<vmem>>, vector<8x32xf32>
    %22 = arith.mulf %17, %21 : vector<8x32xf32>
    %23 = arith.addf %20, %22 : vector<8x32xf32>
    %c0_8 = arith.constant 0 : index
    %c0_9 = arith.constant 0 : index
    %24 = vector.load %arg3[%c0_8, %c0_9] : memref<8x32xf32, #tpu.memory_space<vmem>>, vector<8x32xf32>
    %25 = arith.mulf %18, %24 : vector<8x32xf32>
    %26 = arith.addf %23, %25 : vector<8x32xf32>
    %c0_10 = arith.constant 0 : index
    %c0_11 = arith.constant 0 : index
    %27 = vector.load %arg6[%c0_10, %c0_11] : memref<8x64xf32, #tpu.memory_space<vmem>>, vector<8x32xf32>
    tpu.vector_store %arg6[%c0_10, %c0_11], %26 {strides = array<i32>} : memref<8x64xf32, #tpu.memory_space<vmem>>, vector<8x32xf32>,
    %28 = math.tanh %26 : vector<8x32xf32>
    %c0_12 = arith.constant 0 : index
    %c32 = arith.constant 32 : index
    %29 = vector.load %arg6[%c0_12, %c32] : memref<8x64xf32, #tpu.memory_space<vmem>>, vector<8x32xf32>
    tpu.vector_store %arg6[%c0_12, %c32], %28 {strides = array<i32>} : memref<8x64xf32, #tpu.memory_space<vmem>>, vector<8x32xf32>,
    return
  }
  func.func @transform_0(%arg0: i32) -> (i32, i32) {
    %c0_i32 = arith.constant 0 : i32
    %c0_i32_0 = arith.constant 0 : i32
    return %arg0, %c0_i32 : i32, i32
  }
  func.func @transform_1(%arg0: i32) -> (i32, i32) {
    %c0_i32 = arith.constant 0 : i32
    %c0_i32_0 = arith.constant 0 : i32
    return %arg0, %c0_i32 : i32, i32
  }
  func.func @transform_2(%arg0: i32) -> (i32, i32) {
    %c0_i32 = arith.constant 0 : i32
    %c0_i32_0 = arith.constant 0 : i32
    return %arg0, %c0_i32 : i32, i32
  }
  func.func @transform_3(%arg0: i32) -> (i32, i32) {
    %c0_i32 = arith.constant 0 : i32
    %c0_i32_0 = arith.constant 0 : i32
    %c0_i32_1 = arith.constant 0 : i32
    return %c0_i32, %c0_i32_0 : i32, i32
  }
  func.func @transform_4(%arg0: i32) -> (i32, i32) {
    %c0_i32 = arith.constant 0 : i32
    %c0_i32_0 = arith.constant 0 : i32
    %c0_i32_1 = arith.constant 0 : i32
    return %c0_i32, %c0_i32_0 : i32, i32
  }
  func.func @transform_5(%arg0: i32) -> (i32, i32) {
    %c0_i32 = arith.constant 0 : i32
    %c0_i32_0 = arith.constant 0 : i32
    return %arg0, %c0_i32 : i32, i32
  }
}

</mosaic_0001>

<bundles_post_ra>
// kernel: tpu_custom_call.1
= control target key start
LH: loop header
LB: loop body
LE: loop exit
PB: predicated region body
PF: predicated region fallthrough
CT: control target
= control target key end

     0   :  { %10 = vsyncpa [#allocation3], 0  ;;  %s501_s0 = inlined_call_operand.hbm [shape: f32[8,32], index: 0, kind: input, shape index: {}]   ;;  %s502_s1 = inlined_call_operand.hbm [shape: f32[8,32], index: 1, kind: input, shape index: {}]   ;;  %s503_s2 = inlined_call_operand.hbm [shape: f32[8,32], index: 2, kind: input, shape index: {}]   ;;  %s504_s3 = inlined_call_operand.hbm [shape: f32[32,128], index: 3, kind: input, shape index: {}]   ;;  %s505_s4 = inlined_call_operand.vmem [shape: f32[1,128], index: 4, kind: input, shape index: {}]   ;;  %s506_s5 = inlined_call_operand.hbm [shape: f32[8,64], index: 5, kind: output, shape index: {}]  }
   0x1   :  { %11 = vsyncpa [#allocation6], 0 }
   0x2   :  { %12 = vsyncpa [#allocation9], 0 }
   0x3   :  { %13 = vsyncpa [#allocation4], 0  ;;  %s383_s18 = smov [#allocation5]   ;;  %s384_s20 = smov [#allocation2]  }
   0x4   :  { %s30_s19 = sshll.u32 %s383_s18, 4  ;;  %s20_s21 = sshll.u32 %s384_s20, 4  ;;  %s31_s19 = int_to_ptr.vmem [resolvable:$true] %s30_s19  ;;  %s21_s21 = int_to_ptr.vmem [resolvable:$true] %s20_s21 }
   0x5   :  { %s265_s24 = scalar_lea.hbm %s502_s1, 128 }
   0x6   :  { %p266_p0 = scmp.ne.s32.totalorder %s502_s1, %s265_s24  ;;  %p269_p1 = scmp.lt.u32.totalorder %s265_s24, %s502_s1 }
   0x8   :  { %p271_p2 = pnand %p269_p1, %p266_p0 }
   0xa   :  { %274 = shalt.err (!%p271_p2)
}
   0xb   :  { %s275_s29 = scalar_lea.vmem %s31_s19, 128  ;;  %p280_p4 = scmp.lt.s32.totalorder %s31_s19, %s31_s19 }
   0xc   :  { %p276_p3 = scmp.ne.s32.totalorder %s31_s19, %s275_s29  ;;  %p281_p5 = scmp.lt.s32.totalorder %s275_s29, %s275_s29 }
   0xe   :  { %p282_p6 = por %p281_p5, %p280_p4 }
  0x10   :  { %p283_p7 = pnand %p282_p6, %p276_p3 }
  0x12   :  { %286 = shalt.err (!%p283_p7)
}
  0x13   :  { %33 = dma.hbm_to_vmem [thread:$0]  %s502_s1, 128, %s31_s19, [#allocation6]  }
  0x14   :  { %s287_s9 = scalar_lea.hbm %s501_s0, 128 }
  0x15   :  { %p288_p8 = scmp.ne.s32.totalorder %s501_s0, %s287_s9  ;;  %p291_p9 = scmp.lt.u32.totalorder %s287_s9, %s501_s0 }
  0x17   :  { %p293_p10 = pnand %p291_p9, %p288_p8 }
  0x19   :  { %296 = shalt.err (!%p293_p10)
}
  0x1a   :  { %s297_s14 = scalar_lea.vmem %s21_s21, 128  ;;  %p302_p12 = scmp.lt.s32.totalorder %s21_s21, %s21_s21 }
  0x1b   :  { %p298_p11 = scmp.ne.s32.totalorder %s21_s21, %s297_s14  ;;  %p303_p13 = scmp.lt.s32.totalorder %s297_s14, %s297_s14 }
  0x1d   :  { %p304_p0 = por %p303_p13, %p302_p12 }
  0x1f   :  { %p305_p1 = pnand %p304_p0, %p298_p11 }
  0x21   :  { %308 = shalt.err (!%p305_p1)
}
  0x22   :  { %23 = dma.hbm_to_vmem [thread:$0]  %s501_s0, 128, %s21_s21, [#allocation3]  }
  0x23   :  { %s385_s16 = smov [#allocation7]   ;;  %s386_s18 = smov [#allocation8]  }
  0x24   :  { %s40_s17 = sshll.u32 %s385_s16, 4  ;;  %s49_s19 = sshll.u32 %s386_s18, 4  ;;  %s41_s17 = int_to_ptr.vmem [resolvable:$true] %s40_s17  ;;  %s450_s19 = int_to_ptr.vmem [resolvable:$true] %s49_s19 }
  0x25   :  { %s309_s23 = scalar_lea.hbm %s503_s2, 128 }
  0x26   :  { %p310_p2 = scmp.ne.s32.totalorder %s503_s2, %s309_s23  ;;  %p313_p3 = scmp.lt.u32.totalorder %s309_s23, %s503_s2 }
  0x28   :  { %p315_p4 = pnand %p313_p3, %p310_p2 }
  0x2a   :  { %318 = shalt.err (!%p315_p4)
}
  0x2b   :  { %s319_s0 = scalar_lea.vmem %s41_s17, 128  ;;  %p324_p6 = scmp.lt.s32.totalorder %s41_s17, %s41_s17 }
  0x2c   :  { %p320_p5 = scmp.ne.s32.totalorder %s41_s17, %s319_s0  ;;  %p325_p7 = scmp.lt.s32.totalorder %s319_s0, %s319_s0 }
  0x2e   :  { %p326_p8 = por %p325_p7, %p324_p6 }
  0x30   :  { %p327_p9 = pnand %p326_p8, %p320_p5 }
  0x32   :  { %330 = shalt.err (!%p327_p9)
}
  0x33   :  { %43 = dma.hbm_to_vmem [thread:$0]  %s503_s2, 128, %s41_s17, [#allocation6]  }
  0x34   :  { %s331_s6 = scalar_lea.hbm %s504_s3, 512 }
  0x35   :  { %p332_p10 = scmp.ne.s32.totalorder %s504_s3, %s331_s6  ;;  %p335_p11 = scmp.lt.u32.totalorder %s331_s6, %s504_s3 }
  0x37   :  { %p337_p12 = pnand %p335_p11, %p332_p10 }
  0x39   :  { %340 = shalt.err (!%p337_p12)
}
  0x3a   :  { %s341_s11 = scalar_lea.vmem %s450_s19, 512  ;;  %p346_p0 = scmp.lt.s32.totalorder %s450_s19, %s450_s19 }
  0x3b   :  { %p342_p13 = scmp.ne.s32.totalorder %s450_s19, %s341_s11  ;;  %p347_p1 = scmp.lt.s32.totalorder %s341_s11, %s341_s11 }
  0x3d   :  { %p348_p2 = por %p347_p1, %p346_p0 }
  0x3f   :  { %p349_p3 = pnand %p348_p2, %p342_p13 }
  0x41   :  { %352 = shalt.err (!%p349_p3)
}
  0x42   :  { %s387_s2 = smov 128   ;;  %s388_s12 = smov 8  }
  0x43   :  { %55 = dma.hbm_to_vmem [thread:$0]  %s504_s3, 512, %s450_s19, [#allocation9], %s387_s2, %s387_s2, %s388_s12  }
  0x44   :  { %375 = dma.done.wait [#allocation3], 128  }
  0x45   :  { %376 = vsyncadd [#allocation3], 4294967168 }
  0x46   :  { %377 = dma.done.wait [#allocation6], 256  }
  0x47   :  { %378 = vsyncadd [#allocation6], 4294967040 }
  0x48   :  { %379 = dma.done.wait [#allocation9], 512  }
  0x49   :  { %380 = vsyncadd [#allocation9], 4294966784  ;;  %v389_v0 = vmov 0.0|0.0   ;;  %vm390_vm0 = vmmov 0   ;;  %v391_v1 = vmov 0.0   ;;  %v71_v2 = vld [vmem:[#allocation8] sm:$0xff]  ;;  %v156_v18 = vlaneseq }
  0x4a   :  { %238 = vmatprep.subr.bf16.mxu0 %v389_v0  ;;  %235 = vmatprep.mubr.msk.f32.mxu0 %vm390_vm0, %v391_v1  ;;  %v72_v3 = vld [vmem:[#allocation8 + $0x8] sm:$0xff]  ;;  %v73_v4 = vld [vmem:[#allocation8 + $0x10] sm:$0xff]  ;;  %v74_v6 = vld [vmem:[#allocation8 + $0x18] sm:$0xff]  ;;  %s392_s1 = smov 32   ;;  %s393_s3 = smov 64   ;;  %vm82_vm1 = vcmask 261120  }
  0x4b   :  { %v239_v5 = vpack.c.bf16 %v72_v3, %v71_v2  ;;  %v172_v7 = vld [vmem:[#allocation5] sm:$0xff]  ;;  %v242_v8 = vpack.c.bf16 %v74_v6, %v73_v4  ;;  %v183_v9 = vld [vmem:[#allocation7] sm:$0xff]  ;;  %v70_v10 = vld [vmem:[#allocation2] sm:$0xff]  ;;  %v157_v20 = vand.u32 127, %v156_v18  ;;  %s395_s17 = smov [#allocation10]   ;;  %vm200_vm3 = vcmask 523520  }
  0x4c   :  { %174 = vrot.lane.b32.xlu0 %v172_v7, %s392_s1  ;;  %v219_v11 = vld [vmem:[%s505_s4] ss:$0 sm:$0xff]  ;;  %s394_s4 = smov 96   ;;  %s208_s18 = sshll.u32 %s395_s17, 4  ;;  %s209_s18 = int_to_ptr.vmem [resolvable:$true] %s208_s18 }
  0x4d   :  { %240 = vmatpush3.bf16.msra.mxu0 %v239_v5  ;;  %vm158_vm2 = vcmp.lt.s32.totalorder %v157_v20, 96  ;;  %s353_s19 = scalar_lea.vmem %s209_s18, 128  ;;  %p358_p5 = scmp.lt.s32.totalorder %s209_s18, %s209_s18 }
  0x4e   :  { %241 = vmatprep.subr.bf16.mxu0 %v389_v0  ;;  %p354_p4 = scmp.ne.s32.totalorder %s209_s18, %s353_s19  ;;  %p359_p6 = scmp.lt.s32.totalorder %s353_s19, %s353_s19 }
  0x50   :  { %185 = vrot.lane.b32.xlu0 %v183_v9, %s393_s3  ;;  %p360_p7 = por %p359_p6, %p358_p5 }
  0x51   :  { %243 = vmatpush3.bf16.msra.mxu0 %v242_v8 }
  0x52   :  { %p361_p8 = pnand %p360_p7, %p354_p4 }
  0x54   :  { %236 = vmatmul.mubr.msk.f32.vlgmr.msra.gmra.mrb[0].mxu0 %vm82_vm1, %v70_v10 }
  0xbe   :  { %v175_v19 = vpop.permute.xlu0 %174 }
  0xc2   :  { %v186_v22 = vpop.permute.xlu0 %185 }
 0x127   :  { %v152_v12 = vpop.f32.mrb[0].mxu0 }
 0x128   :  { %v153_v13 = vadd.f32 %v219_v11, %v152_v12  ;;  %v237_v14 = vpop.f32.mrb[1].mxu0 }
 0x12a   :  { %v221_v15 = vmul.f32 -1.442695, %v153_v13 }
 0x12c   :  { %257 = vpow2.f32 %v221_v15 }
 0x12d   :  { %259 = vtanh.f32 %v153_v13 }
 0x136   :  { %v258_v16 = vpop.eup %257 }
 0x137   :  { %v162_v17 = vadd.f32 1.0, %v258_v16  ;;  %v260_v21 = vpop.eup %259 }
 0x139   :  { %261 = vrcp.f32 %v162_v17 }
 0x143   :  { %v262_v23 = vpop.eup %261 }
 0x144   :  { %v166_v24 = vsel %vm158_vm2, %v262_v23, %v260_v21 }
 0x145   :  { %v188_v25 = vmul.f32 %v186_v22, %v166_v24  ;;  %168 = vrot.lane.b32.xlu1 %v166_v24, %s392_s1  ;;  %v177_v26 = vmul.f32 %v175_v19, %v166_v24 }
 0x147   :  { %190 = vrot.lane.b32.xlu0 %v188_v25, %s393_s3 }
 0x149   :  { %179 = vrot.lane.b32.xlu1 %v177_v26, %s394_s4 }
 0x1b7   :  { %v169_v27 = vpop.permute.xlu1 %168 }
 0x1b8   :  { %v171_v28 = vmul.f32 %v169_v27, %v166_v24 }
 0x1b9   :  { %v191_v31 = vpop.permute.xlu0 %190 }
 0x1bb   :  { %v180_v29 = vpop.permute.xlu1 %179 }
 0x1bc   :  { %v182_v30 = vadd.f32 %v180_v29, %v171_v28 }
 0x1be   :  { %v193_v32 = vadd.f32 %v191_v31, %v182_v30 }
 0x1c0   :  { %263 = vtanh.f32 %v193_v32  ;;  %194 = vst.msk [vmem:[#allocation10] sm:$0xff] %vm82_vm1, %v193_v32 }
 0x1ca   :  { %v264_v33 = vpop.eup %263 }
 0x1cb   :  { %197 = vrot.lane.b32.xlu1 %v264_v33, %s392_s1 }
 0x23d   :  { %v198_v34 = vpop.permute.xlu1 %197 }
 0x23e   :  { %201 = vst.msk [vmem:[#allocation10] sm:$0xff] %vm200_vm3, %v198_v34 }
 0x23f   :  { %364 = shalt.err (!%p361_p8)
}
 0x240   :  { %s365_s23 = scalar_lea.hbm %s506_s5, 128 }
 0x241   :  { %p366_p9 = scmp.ne.s32.totalorder %s506_s5, %s365_s23  ;;  %p369_p10 = scmp.lt.u32.totalorder %s365_s23, %s506_s5 }
 0x243   :  { %p371_p11 = pnand %p369_p10, %p366_p9 }
 0x245   :  { %374 = shalt.err (!%p371_p11)
}
 0x246   :  { %211 = dma.vmem_to_hbm [thread:$0]  %s209_s18, 128, %s506_s5, [#allocation4]  }
 0x247   :  { %381 = dma.done.wait [#allocation4], 128  }
 0x248   :  { %382 = vsyncadd [#allocation4], 4294967168 }
 0x249   :  { %215 = vsyncpa [#allocation3], 1 }
 0x24a   :  { %216 = vsyncpa [#allocation6], 1 }
 0x24b   :  { %217 = vsyncpa [#allocation9], 1 }
 0x24c   :  { %218 = vsyncpa [#allocation4], 1 }

</bundles_post_ra>
